<compile_context>
chip_gen: v6e
topology: v6e:2x2x1
jax: 0.10.0
libtpu: 0.0.40
codegen_flags: <defaults>
</compile_context>

<pallas_src>
import math

import jax
import jax.numpy as jnp
from jax.experimental import pallas as pl
from jax.experimental.pallas import tpu as pltpu

V = 778            # MANO vertices per hand
C = 3              # xyz
FEAT = V * C       # 2334 features per (stage, batch, hand)
OUT_FEAT = 2 * FEAT  # 4668 = right|left concatenated along lanes
SCALE = 1000.0


def vertex_loss_kernel(mr_ref, ml_ref, gtr_ref, gtl_ref, wr_ref, wl_ref, out_ref):
    # mr_ref/ml_ref: (TR, FEAT)  predicted vertices, native dtype (rows = flat s*B+b)
    # gtr_ref/gtl_ref: (TR, FEAT) float32 GT, pre-tiled so row r matches b = r % B
    # wr_ref/wl_ref: (TR, 1) float32 = SCALE * mano_valid[b, hand] (SCALE folded in)
    # out_ref: (TR, 2*FEAT) float32; lanes [0,FEAT) = right hand, [FEAT,2*FEAT) = left
    out_ref[:, :FEAT] = (
        jnp.abs(mr_ref[...].astype(jnp.float32) - gtr_ref[...]) * wr_ref[...]
    )
    out_ref[:, FEAT:] = (
        jnp.abs(ml_ref[...].astype(jnp.float32) - gtl_ref[...]) * wl_ref[...]
    )


def _round_up(x, m):
    return (x + m - 1) // m * m


def _block_vmem_bytes(tr, in_itemsize):
    """Estimated VMEM for one pipeline stage (with (8,128)-family padding), x2 buffers."""
    def padded(rows, cols, item):
        sub = 8 * max(1, 4 // item)          # f32 -> 8, bf16 -> 16, int8 -> 32 sublanes
        return _round_up(rows, sub) * _round_up(cols, 128) * item

    per_buf = (
        2 * padded(tr, FEAT, in_itemsize)    # mesh_right, mesh_left tiles
        + 2 * padded(tr, FEAT, 4)            # gt_right, gt_left tiles (f32)
        + 2 * padded(tr, 1, 4)               # validity weights
        + padded(tr, OUT_FEAT, 4)            # output tile (f32)
    )
    return 2 * per_buf                       # double-buffered pipeline


def _pick_tile_rows(R, B, in_itemsize, budget_bytes=12 << 20, target_rows=64):
    """Row-tile size: multiple of lcm(8, B) (sublane-dense + b-phase aligned),
    ~64 rows (~1100 equivalent 128-wide rows), capped by a VMEM budget that is
    safe even under v5e's small default scoped-VMEM."""
    base = (8 * B) // math.gcd(8, B)         # lcm(8, B)
    if base >= R:
        return R                             # single full block (always legal)
    k = max(1, target_rows // base)
    while k > 1 and _block_vmem_bytes(base * k, in_itemsize) > budget_bytes:
        k -= 1
    tr = base * k
    if tr >= R:                              # keep >= 2 grid steps (pipeline / megacore)
        tr = base
    return tr


def vertex_loss(mesh_right, mesh_left, verts_gt, mano_valid):
    """
    mesh_right: (S, B, 778, 3)   predicted right-hand vertices (any float dtype)
    mesh_left:  (S, B, 778, 3)   predicted left-hand vertices
    verts_gt:   (B, 1556, 3)     GT vertices (right 778 then left 778)
    mano_valid: (B, 2)           [right_valid, left_valid]
    returns:    (S, B, 1556, 3)  float32 elementwise loss
    """
    S, B, Vd, Cd = mesh_right.shape
    assert (Vd, Cd) == (V, C)
    assert mesh_left.shape == mesh_right.shape
    assert verts_gt.shape == (B, 2 * V, C)
    assert mano_valid.shape == (B, 2)

    R = S * B
    # Free row-major views only -- no copies of the large tensors.
    mr = mesh_right.reshape(R, FEAT)
    ml = mesh_left.reshape(R, FEAT)

    in_item = jnp.dtype(mesh_right.dtype).itemsize
    tr = _pick_tile_rows(R, B, in_item)
    reps = tr // B                           # tr is always a multiple of B

    # Tiny constant operands (<= ~1 MiB): GT and SCALE*valid pre-tiled to one row
    # block so row r of a tile lines up with batch index b = r % B.  Constant
    # index_map below means they are fetched once and stay resident in VMEM.
    gt = verts_gt.astype(jnp.float32).reshape(B, 2, FEAT)
    gtr_t = jnp.tile(gt[:, 0, :], (reps, 1))                     # (tr, FEAT)
    gtl_t = jnp.tile(gt[:, 1, :], (reps, 1))                     # (tr, FEAT)
    w = mano_valid.astype(jnp.float32) * SCALE                   # fold SCALE into mask
    wr_t = jnp.tile(w[:, 0:1], (reps, 1))                        # (tr, 1)
    wl_t = jnp.tile(w[:, 1:2], (reps, 1))                        # (tr, 1)

    grid = (pl.cdiv(R, tr),)
    est = _block_vmem_bytes(tr, in_item)
    vmem_limit = int(min(max(2 * est, 16 << 20), 48 << 20))

    out = pl.pallas_call(
        vertex_loss_kernel,
        out_shape=jax.ShapeDtypeStruct((R, OUT_FEAT), jnp.float32),
        grid=grid,
        in_specs=[
            pl.BlockSpec((tr, FEAT), lambda i: (i, 0)),          # mesh_right rows
            pl.BlockSpec((tr, FEAT), lambda i: (i, 0)),          # mesh_left rows
            pl.BlockSpec((tr, FEAT), lambda i: (0, 0)),          # gt_right (resident)
            pl.BlockSpec((tr, FEAT), lambda i: (0, 0)),          # gt_left  (resident)
            pl.BlockSpec((tr, 1), lambda i: (0, 0)),             # right weight
            pl.BlockSpec((tr, 1), lambda i: (0, 0)),             # left weight
        ],
        out_specs=pl.BlockSpec((tr, OUT_FEAT), lambda i: (i, 0)),
        compiler_params=pltpu.CompilerParams(
            dimension_semantics=("parallel",),
            vmem_limit_bytes=vmem_limit,
        ),
    )(mr, ml, gtr_t, gtl_t, wr_t, wl_t)

    # Free view back to the PyTorch output layout.
    return out.reshape(S, B, 2 * V, C)


def vertex_loss_ref(mesh_right, mesh_left, verts_gt, mano_valid):
    """Pure-JAX reference mirroring the PyTorch forward (hand_type == 'both')."""
    bs = verts_gt.shape[0]
    verts_out = jnp.concatenate([mesh_right, mesh_left], axis=2)          # (S,B,1556,3)
    ones = jnp.ones((bs, V, C), jnp.float32)
    verts_valid = jnp.concatenate(
        [ones * mano_valid[:, :1, None], ones * mano_valid[:, 1:, None]], axis=1
    )[None]                                                               # (1,B,1556,3)
    verts_gt1 = verts_gt[None]
    return jnp.abs((verts_out.astype(jnp.float32) - verts_gt1) * SCALE) * verts_valid


if __name__ == "__main__":
    key = jax.random.PRNGKey(0)
    k1, k2, k3, k4 = jax.random.split(key, 4)

    S, B = 8, 2
    mesh_right = jax.random.normal(k1, (S, B, V, C), dtype=jnp.float32)
    mesh_left = jax.random.normal(k2, (S, B, V, C), dtype=jnp.float32)
    verts_gt = jax.random.normal(k3, (B, 2 * V, C), dtype=jnp.float32)
    mano_valid = (jax.random.uniform(k4, (B, 2)) > 0.3).astype(jnp.float32)

    out = vertex_loss(mesh_right, mesh_left, verts_gt, mano_valid)
    jax.block_until_ready(out)

    ref = vertex_loss_ref(mesh_right, mesh_left, verts_gt, mano_valid)
    assert out.shape == (S, B, 2 * V, C)
    err = float(jnp.max(jnp.abs(out - ref)))
    assert jnp.allclose(out, ref, rtol=1e-5, atol=1e-2), err

    print("KERNEL_OK")
</pallas_src>

<mosaic_0001>
module attributes {stable_mosaic.version = 11 : i64} {
  func.func @vertex_loss_kernel(%arg0: i32, %arg1: memref<8x2334xf32, #tpu.memory_space<vmem>>, %arg2: memref<8x2334xf32, #tpu.memory_space<vmem>>, %arg3: memref<8x2334xf32, #tpu.memory_space<vmem>>, %arg4: memref<8x2334xf32, #tpu.memory_space<vmem>>, %arg5: memref<8x1xf32, #tpu.memory_space<vmem>>, %arg6: memref<8x1xf32, #tpu.memory_space<vmem>>, %arg7: memref<8x4668xf32, #tpu.memory_space<vmem>>) attributes {dimension_semantics = [#tpu.dimension_semantics<parallel>], iteration_bounds = array<i64: 2>, scalar_prefetch = 0 : i64, scratch_operands = 0 : i64, tpu.core_type = #tpu.core_type<tc>, window_params = [{transform_indices = @transform_0, window_bounds = array<i64: 8, 2334>}, {transform_indices = @transform_1, window_bounds = array<i64: 8, 2334>}, {pipeline_mode = #tpu.pipeline_mode<synchronous>, transform_indices = @transform_2, window_bounds = array<i64: 8, 2334>}, {pipeline_mode = #tpu.pipeline_mode<synchronous>, transform_indices = @transform_3, window_bounds = array<i64: 8, 2334>}, {pipeline_mode = #tpu.pipeline_mode<synchronous>, transform_indices = @transform_4, window_bounds = array<i64: 8, 1>}, {pipeline_mode = #tpu.pipeline_mode<synchronous>, transform_indices = @transform_5, window_bounds = array<i64: 8, 1>}, {transform_indices = @transform_6, window_bounds = array<i64: 8, 4668>}]} {
    %c0 = arith.constant 0 : index
    %c0_0 = arith.constant 0 : index
    %0 = vector.load %arg1[%c0, %c0_0] : memref<8x2334xf32, #tpu.memory_space<vmem>>, vector<8x2334xf32>
    %c0_1 = arith.constant 0 : index
    %c0_2 = arith.constant 0 : index
    %1 = vector.load %arg3[%c0_1, %c0_2] : memref<8x2334xf32, #tpu.memory_space<vmem>>, vector<8x2334xf32>
    %2 = arith.subf %0, %1 : vector<8x2334xf32>
    %3 = math.absf %2 : vector<8x2334xf32>
    %c0_3 = arith.constant 0 : index
    %c0_4 = arith.constant 0 : index
    %4 = vector.load %arg5[%c0_3, %c0_4] : memref<8x1xf32, #tpu.memory_space<vmem>>, vector<8x1xf32>
    %5 = vector.broadcast %4 : vector<8x1xf32> to vector<8x2334xf32>
    %6 = arith.mulf %3, %5 : vector<8x2334xf32>
    %c0_5 = arith.constant 0 : index
    %c0_6 = arith.constant 0 : index
    %7 = vector.load %arg7[%c0_5, %c0_6] : memref<8x4668xf32, #tpu.memory_space<vmem>>, vector<8x2334xf32>
    tpu.vector_store %arg7[%c0_5, %c0_6], %6 {strides = array<i32>} : memref<8x4668xf32, #tpu.memory_space<vmem>>, vector<8x2334xf32>,
    %c0_7 = arith.constant 0 : index
    %c0_8 = arith.constant 0 : index
    %8 = vector.load %arg2[%c0_7, %c0_8] : memref<8x2334xf32, #tpu.memory_space<vmem>>, vector<8x2334xf32>
    %c0_9 = arith.constant 0 : index
    %c0_10 = arith.constant 0 : index
    %9 = vector.load %arg4[%c0_9, %c0_10] : memref<8x2334xf32, #tpu.memory_space<vmem>>, vector<8x2334xf32>
    %10 = arith.subf %8, %9 : vector<8x2334xf32>
    %11 = math.absf %10 : vector<8x2334xf32>
    %c0_11 = arith.constant 0 : index
    %c0_12 = arith.constant 0 : index
    %12 = vector.load %arg6[%c0_11, %c0_12] : memref<8x1xf32, #tpu.memory_space<vmem>>, vector<8x1xf32>
    %13 = vector.broadcast %12 : vector<8x1xf32> to vector<8x2334xf32>
    %14 = arith.mulf %11, %13 : vector<8x2334xf32>
    %c0_13 = arith.constant 0 : index
    %c2334 = arith.constant 2334 : index
    %15 = vector.load %arg7[%c0_13, %c2334] : memref<8x4668xf32, #tpu.memory_space<vmem>>, vector<8x2334xf32>
    tpu.vector_store %arg7[%c0_13, %c2334], %14 {strides = array<i32>} : memref<8x4668xf32, #tpu.memory_space<vmem>>, vector<8x2334xf32>,
    return
  }
  func.func @transform_0(%arg0: i32) -> (i32, i32) {
    %c0_i32 = arith.constant 0 : i32
    %c0_i32_0 = arith.constant 0 : i32
    return %arg0, %c0_i32 : i32, i32
  }
  func.func @transform_1(%arg0: i32) -> (i32, i32) {
    %c0_i32 = arith.constant 0 : i32
    %c0_i32_0 = arith.constant 0 : i32
    return %arg0, %c0_i32 : i32, i32
  }
  func.func @transform_2(%arg0: i32) -> (i32, i32) {
    %c0_i32 = arith.constant 0 : i32
    %c0_i32_0 = arith.constant 0 : i32
    %c0_i32_1 = arith.constant 0 : i32
    return %c0_i32, %c0_i32_0 : i32, i32
  }
  func.func @transform_3(%arg0: i32) -> (i32, i32) {
    %c0_i32 = arith.constant 0 : i32
    %c0_i32_0 = arith.constant 0 : i32
    %c0_i32_1 = arith.constant 0 : i32
    return %c0_i32, %c0_i32_0 : i32, i32
  }
  func.func @transform_4(%arg0: i32) -> (i32, i32) {
    %c0_i32 = arith.constant 0 : i32
    %c0_i32_0 = arith.constant 0 : i32
    %c0_i32_1 = arith.constant 0 : i32
    return %c0_i32, %c0_i32_0 : i32, i32
  }
  func.func @transform_5(%arg0: i32) -> (i32, i32) {
    %c0_i32 = arith.constant 0 : i32
    %c0_i32_0 = arith.constant 0 : i32
    %c0_i32_1 = arith.constant 0 : i32
    return %c0_i32, %c0_i32_0 : i32, i32
  }
  func.func @transform_6(%arg0: i32) -> (i32, i32) {
    %c0_i32 = arith.constant 0 : i32
    %c0_i32_0 = arith.constant 0 : i32
    return %arg0, %c0_i32 : i32, i32
  }
}

</mosaic_0001>

<bundles_post_ra>
// kernel: tpu_custom_call.1
= control target key start
LH: loop header
LB: loop body
LE: loop exit
PB: predicated region body
PF: predicated region fallthrough
CT: control target
= control target key end

     0   :  { %s1528_s0 = inlined_call_operand.hbm [shape: f32[16,2334], index: 0, kind: input, shape index: {}]   ;;  %s1529_s1 = inlined_call_operand.hbm [shape: f32[16,2334], index: 1, kind: input, shape index: {}]   ;;  %s1530_s2 = inlined_call_operand.hbm [shape: f32[8,2334], index: 2, kind: input, shape index: {}]   ;;  %s1531_s3 = inlined_call_operand.hbm [shape: f32[8,2334], index: 3, kind: input, shape index: {}]   ;;  %s1532_s4 = inlined_call_operand.vmem [shape: f32[8,1], index: 4, kind: input, shape index: {}]   ;;  %s1533_s5 = inlined_call_operand.vmem [shape: f32[8,1], index: 5, kind: input, shape index: {}]   ;;  %s1534_s6 = inlined_call_operand.hbm [shape: f32[16,4668], index: 6, kind: output, shape index: {}]  }
   0x1   :  { %1540 = sst [smem:[#allocation16_spill]] %s1530_s2 }
   0x2   :  { %11 = vsyncpa [#allocation3], 0 }
   0x3   :  { %13 = vsyncpa [#allocation3 + $0x1], 0 }
   0x4   :  { %14 = vsyncpa [#allocation6], 0 }
   0x5   :  { %16 = vsyncpa [#allocation6 + $0x1], 0 }
   0x6   :  { %17 = vsyncpa [#allocation9], 0 }
   0x7   :  { %18 = vsyncpa [#allocation4], 0 }
   0x8   :  { %20 = vsyncpa [#allocation4 + $0x1], 0  ;;  %s1118_s21 = smov 0   ;;  %s1120_s22 = smov 0  }
   0x9   :  { %s1122_s23 = smov 0   ;;  %s1124_s24 = smov 0  }
   0xa LB: > { %s1139_s25 = sadd.s32 4294967295, %s1074_s24   ;;  %s795_s26 = sadd.s32 4294967294, %s1074_s24   ;;  %s1074_s24 = sphi %s1124_s24, %s1563_s24   ;;  %s1070_s23 = sphi %s1122_s23, %s1562_s23   ;;  %s1066_s22 = sphi %s1120_s22, %s1561_s22   ;;  %s1062_s21 = sphi %s1118_s21, %s1560_s21  }
   0xb   : > { %p46_p0 = scmp.ne.s32.totalorder %s1066_s22, %s1062_s21  ;;  %p1535_p1 = scmp.eq.s32.totalorder %s1139_s25, 0 }
   0xc   : > { %p186_p3 = scmp.eq.s32.totalorder %s795_s26, 1  ;;  %p796_p5 = scmp.ge.s32.totalorder %s1074_s24, 1 }
   0xd   : > { %p1148_p4 = por %p1535_p1, %p46_p0  ;;  %p193_p7 = scmp.lt.s32.totalorder %s1074_s24, 3 }
   0xe   : > { %p1153_p6 = por %p186_p3, %p46_p0  ;;  %s1076_s30 = smov [#allocation7]  }
   0xf   : > { %s1541_s27 = scalar_select %p1148_p4, 1, 0 }
  0x10   : > { %s1542_s28 = scalar_select %p1153_p6, 1, 0 }
  0x11   : > { %p1158_p8 = pnand %p796_p5, %p193_p7  ;;  %s206_s7 = sshll.u32 %s1076_s30, 4  ;;  %s207_s7 = int_to_ptr.vmem [resolvable:$true] %s206_s7 }
  0x12   : > { %s1077_s8 = smov [#allocation8]   ;;  %s1172_s11 = sadd.s32 1, %s1074_s24  }
  0x13   : > { %s1543_s29 = scalar_select %p1158_p8, 1, 0 }
  0x14   : > { %p829_p10 = pneg %p1158_p8  ;;  %s217_s9 = sshll.u32 %s1077_s8, 4  ;;  %s218_s9 = int_to_ptr.vmem [resolvable:$true] %s217_s9 }
  0x15   : > { %s30_s12 = ssub.s32 %s1074_s24, %s1172_s11  ;;  %s901_s13 = scalar_lea.vmem %s207_s7, 2432 }
  0x16   : > { %p1167_p11 = pnand %p829_p10, %p1535_p1  ;;  %p902_p13 = scmp.ne.s32.totalorder %s207_s7, %s901_s13 }
  0x17   : > { %p909_p5 = scmp.lt.s32.totalorder %s207_s7, %s207_s7  ;;  %p910_p7 = scmp.lt.s32.totalorder %s901_s13, %s901_s13 }
  0x18   : > { %p892_p12 = pneg %p1167_p11 }
  0x19   : > { %p911_p10 = por %p910_p7, %p909_p5 }
  0x1a   : > { %p904_p0 = pnand %p902_p13, %p892_p12 }
  0x1c   : > { %p905_p3 = pneg %p904_p0 }
  0x1e   : > { %p912_p9 = pnand %p911_p10, %p905_p3 }
  0x20   : > { %915 = shalt.err (!%p912_p9)
}
  0x21   : > { %s1545_s2 = sld [smem:[#allocation16_spill]]  ;;  %s927_s16 = scalar_lea.vmem %s218_s9, 2432 }
  0x22   : > { %p928_p1 = scmp.ne.s32.totalorder %s218_s9, %s927_s16  ;;  %p935_p13 = scmp.lt.s32.totalorder %s218_s9, %s218_s9 }
  0x23   : > { %p936_p0 = scmp.lt.s32.totalorder %s927_s16, %s927_s16 }
  0x24   : > { %p930_p2 = pnand %p928_p1, %p892_p12 }
  0x25   : > { %p937_p4 = por %p936_p0, %p935_p13 }
  0x26   : > { %p931_p6 = pneg %p930_p2 }
  0x27   : > { %832 = dma.hbm_to_vmem [thread:$0]  (!%p1167_p11), %s1545_s2, 2432, %s207_s7, [#allocation6]  }
  0x28   : > { %p938_p8 = pnand %p937_p4, %p931_p6 }
  0x2a   : > { %941 = shalt.err (!%p938_p8)
}
  0x2b   : > { %835 = dma.hbm_to_vmem [thread:$0]  (!%p1167_p11), %s1531_s3, 2432, %s218_s9, [#allocation9]  }
  0x2c   : > { %p31_p1 = scmp.eq.s32.totalorder %s30_s12, 0  ;;  %s33_s19 = sadd.s32 1, %s1070_s23 }
  0x2d   : > { %p40_p2 = scmp.ne.s32.totalorder %s1070_s23, %s1066_s22  ;;  %p41_p4 = scmp.eq.s32.totalorder %s1074_s24, 0 }
  0x2e   : > { %s1199_s20 = scalar_select %p31_p1, %s1070_s23, %s33_s19  }
  0x2f   : > { %p42_p6 = por %p41_p4, %p40_p2  ;;  %p1546_p8 = scmp.eq.s32.totalorder %s1139_s25, 1 }
  0x30   : > { %p849_p12 = scmp.lt.s32.totalorder %s1074_s24, 2  ;;  %s234_s30 = sand.u32 1, %s1070_s23  }
  0x31   : > { %p1203_p9 = por %p1546_p8, %p40_p2  ;;  %s1209_s7 = smul.u32 152, %s234_s30 }
  0x32   : > { %s1538_s8 = smul.u32 2432, %s1074_s24  ;;  %p1212_p3 = pnand %p849_p12, %p42_p6 }
  0x33   : > { %s1547_s26 = scalar_select %p1203_p9, 1, 0 }
  0x34   : > { %s1222_s14 = scalar_lea.hbm %s1528_s0, %s1538_s8  ;;  %s238_s15 = scalar_lea.vmem [#allocation2], %s1209_s7 }
  0x35   : > { %s246_s16 = sshll.u32 %s238_s15, 4  ;;  %s235_s17 = scalar_lea.sflag [#allocation3], %s234_s30  ;;  %s247_s16 = int_to_ptr.vmem [resolvable:$true] %s246_s16 }
  0x36   : > { %s942_s18 = scalar_lea.hbm %s1222_s14, 2432  ;;  %p944_p5 = pneg %p1212_p3 }
  0x37   : > { %p943_p11 = scmp.ne.s32.totalorder %s1222_s14, %s942_s18  ;;  %s947_s12 = scalar_lea.hbm %s1528_s0, 4864 }
  0x38   : > { %p948_p13 = scmp.lt.s32.totalorder %s1222_s14, %s1528_s0  ;;  %p949_p0 = scmp.lt.s32.totalorder %s947_s12, %s942_s18 }
  0x39   : > { %p945_p7 = pnand %p944_p5, %p943_p11 }
  0x3a   : > { %p950_p1 = por %p949_p0, %p948_p13 }
  0x3b   : > { %p946_p10 = pneg %p945_p7 }
  0x3d   : > { %p951_p2 = pnand %p950_p1, %p946_p10 }
  0x3f   : > { %954 = shalt.err (!%p951_p2)
}
  0x40   : > { %s955_s30 = scalar_lea.vmem %s247_s16, 2432  ;;  %s1078_s15 = smov [#allocation2]  }
  0x41   : > { %p956_p4 = scmp.ne.s32.totalorder %s247_s16, %s955_s30  ;;  %s960_s2 = sshll.u32 %s1078_s15, 4  ;;  %s961_s2 = int_to_ptr.vmem [resolvable:$false] %s960_s2 }
  0x42   : > { %s962_s10 = scalar_lea.vmem %s961_s2, 4864  ;;  %p963_p12 = scmp.lt.s32.totalorder %s247_s16, %s961_s2 }
  0x43   : > { %p958_p6 = pnand %p956_p4, %p944_p5  ;;  %p964_p11 = scmp.lt.s32.totalorder %s962_s10, %s955_s30 }
  0x45   : > { %p959_p8 = pneg %p958_p6  ;;  %p965_p7 = por %p964_p11, %p963_p12 }
  0x47   : > { %p966_p9 = pnand %p965_p7, %p959_p8 }
  0x49   : > { %969 = shalt.err (!%p966_p9)
}
  0x4a   : > { %839 = dma.hbm_to_vmem [thread:$0]  (!%p1212_p3), %s1222_s14, 2432, %s247_s16, %s235_s17  }
  0x4b   : > { %s1549_s8 = smul.u32 2432, %s1074_s24  ;;  %s257_s2 = scalar_lea.vmem [#allocation5], %s1209_s7 }
  0x4c   : > { %s265_s13 = sshll.u32 %s257_s2, 4  ;;  %s1550_s30 = sand.u32 1, %s1074_s24   ;;  %s266_s13 = int_to_ptr.vmem [resolvable:$true] %s265_s13 }
  0x4d   : > { %s1250_s12 = scalar_lea.hbm %s1529_s1, %s1549_s8  ;;  %s254_s15 = scalar_lea.sflag [#allocation6], %s1550_s30 }
  0x4e   : > { %s970_s10 = scalar_lea.hbm %s1250_s12, 2432  ;;  %s975_s17 = scalar_lea.hbm %s1529_s1, 4864 }
  0x4f   : > { %p971_p9 = scmp.ne.s32.totalorder %s1250_s12, %s970_s10  ;;  %p976_p0 = scmp.lt.s32.totalorder %s1250_s12, %s1529_s1 }
  0x50   : > { %p977_p1 = scmp.lt.s32.totalorder %s975_s17, %s970_s10 }
  0x51   : > { %p973_p10 = pnand %p971_p9, %p944_p5 }
  0x52   : > { %p978_p2 = por %p977_p1, %p976_p0 }
  0x53   : > { %p974_p13 = pneg %p973_p10 }
  0x55   : > { %p979_p4 = pnand %p978_p2, %p974_p13 }
  0x57   : > { %982 = shalt.err (!%p979_p4)
}
  0x58   : > { %s983_s7 = scalar_lea.vmem %s266_s13, 2432  ;;  %s1079_s19 = smov [#allocation5]  }
  0x59   : > { %p984_p6 = scmp.ne.s32.totalorder %s266_s13, %s983_s7  ;;  %s988_s2 = sshll.u32 %s1079_s19, 4  ;;  %s989_s2 = int_to_ptr.vmem [resolvable:$false] %s988_s2 }
  0x5a   : > { %s990_s30 = scalar_lea.vmem %s989_s2, 4864  ;;  %p991_p11 = scmp.lt.s32.totalorder %s266_s13, %s989_s2 }
  0x5b   : > { %p986_p8 = pnand %p984_p6, %p944_p5  ;;  %p992_p7 = scmp.lt.s32.totalorder %s990_s30, %s983_s7 }
  0x5d   : > { %p987_p12 = pneg %p986_p8  ;;  %p993_p9 = por %p992_p7, %p991_p11 }
  0x5f   : > { %p994_p10 = pnand %p993_p9, %p987_p12 }
  0x61   : > { %997 = shalt.err (!%p994_p10)
}
  0x62   : > { %842 = dma.hbm_to_vmem [thread:$0]  (!%p1212_p3), %s1250_s12, 2432, %s266_s13, %s254_s15  }
  0x63   : > { %p1551_p13 = scmp.ne.s32.totalorder %s1543_s29, 0 }
  0x64   : > { %s1276_s10 = sand.u32 (!%p1551_p13), 1, %s1066_s22   ;;  %p1552_p5 = scmp.ne.s32.totalorder (!%p1551_p13), %s1541_s27, 0 }
  0x65   : > { %274 = sbr.rel (%p1551_p13) target bundleno = 411 (0x19b), region = 44  ;;  %s277_s16 = scalar_lea.sflag (!%p1551_p13), [#allocation3], %s1276_s10 }
  0x66   : > { %s812_s14 = smul.u32 (!%p1551_p13), 152, %s1276_s10 }
  0x68   : > { %s1280_s17 = scalar_lea.vmem (!%p1551_p13), [#allocation2], %s812_s14 }
  0x6a   : > { %1041 = dma.done.wait (%p1552_p5), %s277_s16, 2432  }
  0x6b   : > { %1043 = vsyncadd (%p1552_p5), %s277_s16, 4294964864  ;;  %s285_s9 = sand.u32 1, %s1139_s25   ;;  %s1287_s12 = scalar_lea.vmem [#allocation5], %s812_s14 }
  0x6c   : > { %s286_s29 = scalar_lea.sflag [#allocation6], %s285_s9 }
  0x6d   : > { %1045 = dma.done.wait (%p1552_p5), %s286_s29, 2432  }
  0x6e   : > { %1047 = vsyncadd (%p1552_p5), %s286_s29, 4294964864  ;;  %p1553_p3 = scmp.eq.s32.totalorder %s1139_s25, 0 }
  0x70   : > { %1049 = dma.done.wait (%p1553_p3), [#allocation6], 2432   ;;  %p1554_p0 = pmov %p1553_p3 }
  0x72   : > { %1051 = vsyncadd (%p1554_p0), [#allocation6], 4294964864  ;;  %p1555_p1 = pmov %p1554_p0 }
  0x73   : > { %p1556_p2 = pmov %p1554_p0 }
  0x74   : > { %1053 = dma.done.wait (%p1555_p1), [#allocation9], 2432  }
  0x75   : > { %1055 = vsyncadd (%p1556_p2), [#allocation9], 4294964864  ;;  %v1080_v0 = vmov 0   ;;  %v528_v1 = vld [vmem:[%s1533_s5] sm:$0xff]  ;;  %v452_v3 = vld [vmem:[%s1287_s12] sm:$0xff]  ;;  %s813_s18 = smul.u32 296, %s1276_s10 }
  0x76   : > { %889 = vset.pattern.permute.xlu0 %v1080_v0  ;;  %v407_v2 = vld [vmem:[%s1532_s4] sm:$0xff]  ;;  %v471_v4 = vld [vmem:[#allocation8] sm:$0xff]  ;;  %v473_v6 = vld [vmem:[#allocation8 + $0x10] sm:$0xff]  ;;  %vm450_vm0 = vcmask 244736   ;;  %s1081_s7 = smov 30   ;;  %vm647_vm1 = vcmask 1047792  }
  0x77   : > { %531 = vperm.xlu0 %889, %v528_v1   ;;  %v454_v5 = vld [vmem:[%s1287_s12 + $0x10] sm:$0xff]  ;;  %v332_v8 = vld [vmem:[%s1280_s17 + $0x8] sm:$0xff]  ;;  %v333_v9 = vld [vmem:[%s1280_s17 + $0x10] sm:$0xff]  ;;  %v490_v13 = vsub.f32 %v452_v3, %v471_v4  ;;  %s1379_s19 = scalar_lea.vmem [#allocation10], %s813_s18  ;;  %s814_s2 = smul.u32 4736, %s1139_s25  ;;  %vm666_vm2 = vcmask 490496  }
  0x78   : > { %v331_v7 = vld [vmem:[%s1280_s17] sm:$0xff]  ;;  %v334_v10 = vld [vmem:[%s1280_s17 + $0x18] sm:$0xff]  ;;  %v336_v14 = vld [vmem:[%s1280_s17 + $0x28] sm:$0xff]  ;;  %v492_v17 = vsub.f32 %v454_v5, %v473_v6  ;;  %s683_s30 = sshll.u32 %s1379_s19, 4  ;;  %s669_s25 = scalar_lea.sflag [#allocation4], %s1276_s10  ;;  %s1483_s30 = int_to_ptr.vmem [resolvable:$true] %s683_s30 }
  0x79   : > { %v335_v11 = vld [vmem:[%s1280_s17 + $0x20] sm:$0xff]  ;;  %v337_v15 = vld [vmem:[%s1280_s17 + $0x30] sm:$0xff]  ;;  %v338_v18 = vld [vmem:[%s1280_s17 + $0x38] sm:$0xff]  ;;  %v1328_v33 = vand.u32 2147483647, %v490_v13  ;;  %s998_s9 = scalar_lea.vmem %s1483_s30, 4736 }
  0x7a   : > { %v350_v12 = vld [vmem:[#allocation7] sm:$0xff]  ;;  %v351_v16 = vld [vmem:[#allocation7 + $0x8] sm:$0xff]  ;;  %v352_v20 = vld [vmem:[#allocation7 + $0x10] sm:$0xff]  ;;  %v511_v41 = vand.u32 2147483647, %v492_v17  ;;  %p999_p4 = scmp.ne.s32.totalorder %s1483_s30, %s998_s9  ;;  %p1557_p6 = scmp.ne.s32.totalorder %s1547_s26, 0 }
  0x7b   : > { %410 = vperm.xlu0 %889, %v407_v2   ;;  %v1318_v19 = vld [vmem:[%s1280_s17 + $0x40] sm:$0xff]  ;;  %v340_v23 = vld [vmem:[%s1280_s17 + $0x48] sm:$0xff]  ;;  %v1322_v24 = vld [vmem:[%s1280_s17 + $0x50] sm:$0xff]  ;;  %v369_v28 = vsub.f32 %v331_v7, %v350_v12  ;;  %v370_v32 = vsub.f32 %v332_v8, %v351_v16  ;;  %v371_v38 = vsub.f32 %v333_v9, %v352_v20  ;;  %s1082_s29 = smov [#allocation10]  }
  0x7c   : > { %v353_v21 = vld [vmem:[#allocation7 + $0x18] sm:$0xff]  ;;  %v354_v22 = vld [vmem:[#allocation7 + $0x20] sm:$0xff]  ;;  %v355_v26 = vld [vmem:[#allocation7 + $0x28] sm:$0xff]  ;;  %p1000_p8 = pnand %p999_p4, %p1557_p6 }
  0x7d   : > { %v1325_v25 = vld [vmem:[%s1280_s17 + $0x58] sm:$0xff]  ;;  %v343_v29 = vld [vmem:[%s1280_s17 + $0x60] sm:$0xff]  ;;  %v344_v34 = vld [vmem:[%s1280_s17 + $0x68] sm:$0xff]  ;;  %v372_v39 = vsub.f32 %v334_v10, %v353_v21  ;;  %v373_v40 = vsub.f32 %v335_v11, %v354_v22  ;;  %v374_v46 = vsub.f32 %v336_v14, %v355_v26  ;;  %v1335_v53 = vand.u32 2147483647, %v369_v28 }
  0x7e   : > { %v356_v27 = vld [vmem:[#allocation7 + $0x30] sm:$0xff]  ;;  %v357_v30 = vld [vmem:[#allocation7 + $0x38] sm:$0xff]  ;;  %v358_v31 = vld [vmem:[#allocation7 + $0x40] sm:$0xff]  ;;  %v1341_v61 = vand.u32 2147483647, %v370_v32  ;;  %p1001_p12 = pneg %p1000_p8 }
  0x7f   : > { %v359_v35 = vld [vmem:[#allocation7 + $0x48] sm:$0xff]  ;;  %v360_v36 = vld [vmem:[#allocation7 + $0x50] sm:$0xff]  ;;  %v361_v37 = vld [vmem:[#allocation7 + $0x58] sm:$0xff]  ;;  %v375_v47 = vsub.f32 %v337_v15, %v356_v27  ;;  %v376_v51 = vsub.f32 %v338_v18, %v357_v30  ;;  %v377_v52 = vsub.f32 %v1318_v19, %v358_v31  ;;  %v390_v1 = vand.u32 2147483647, %v371_v38 }
  0x80   : > { %v345_v42 = vld [vmem:[%s1280_s17 + $0x70] sm:$0xff]  ;;  %v362_v43 = vld [vmem:[#allocation7 + $0x60] sm:$0xff]  ;;  %v346_v48 = vld [vmem:[%s1280_s17 + $0x78] sm:$0xff]  ;;  %v378_v58 = vsub.f32 %v340_v23, %v359_v35  ;;  %v379_v59 = vsub.f32 %v1322_v24, %v360_v36  ;;  %v380_v60 = vsub.f32 %v1325_v25, %v361_v37  ;;  %v391_v2 = vand.u32 2147483647, %v372_v39 }
  0x81   : > { %v363_v44 = vld [vmem:[#allocation7 + $0x68] sm:$0xff]  ;;  %v364_v45 = vld [vmem:[#allocation7 + $0x70] sm:$0xff]  ;;  %v347_v49 = vld [vmem:[%s1280_s17 + $0x80] sm:$0xff]  ;;  %v381_v0 = vsub.f32 %v343_v29, %v362_v43  ;;  %v392_v3 = vand.u32 2147483647, %v373_v40 }
  0x82   : > { %v365_v50 = vld [vmem:[#allocation7 + $0x78] sm:$0xff]  ;;  %v472_v55 = vld [vmem:[#allocation8 + $0x8] sm:$0xff]  ;;  %v456_v62 = vld [vmem:[%s1287_s12 + $0x20] sm:$0xff]  ;;  %v382_v5 = vsub.f32 %v344_v34, %v363_v44  ;;  %v393_v6 = vand.u32 2147483647, %v374_v46  ;;  %v383_v10 = vsub.f32 %v345_v42, %v364_v45 }
  0x83   : > { %v453_v54 = vld [vmem:[%s1287_s12 + $0x8] sm:$0xff]  ;;  %v348_v56 = vld [vmem:[%s1280_s17 + $0x88] sm:$0xff]  ;;  %v394_v7 = vand.u32 2147483647, %v375_v47  ;;  %v395_v11 = vand.u32 2147483647, %v376_v51  ;;  %v384_v16 = vsub.f32 %v346_v48, %v365_v50 }
  0x84   : > { %v366_v57 = vld [vmem:[#allocation7 + $0x80] sm:$0xff]  ;;  %v475_v63 = vld [vmem:[#allocation8 + $0x20] sm:$0xff]  ;;  %v367_v4 = vld [vmem:[#allocation7 + $0x88] sm:$0xff]  ;;  %v491_v8 = vsub.f32 %v453_v54, %v472_v55  ;;  %v396_v18 = vand.u32 2147483647, %v377_v52 }
  0x85   : > { %v455_v9 = vld [vmem:[%s1287_s12 + $0x18] sm:$0xff]  ;;  %v494_v12 = vsub.f32 %v456_v62, %v475_v63  ;;  %v474_v13 = vld [vmem:[#allocation8 + $0x18] sm:$0xff]  ;;  %v458_v14 = vld [vmem:[%s1287_s12 + $0x30] sm:$0xff]  ;;  %v385_v17 = vsub.f32 %v347_v49, %v366_v57  ;;  %v397_v19 = vand.u32 2147483647, %v378_v58  ;;  %v386_v22 = vsub.f32 %v348_v56, %v367_v4 }
  0x86   : > { %v477_v15 = vld [vmem:[#allocation8 + $0x30] sm:$0xff]  ;;  %v368_v21 = vld [vmem:[#allocation7 + $0x90] sm:$0xff]  ;;  %v398_v23 = vand.u32 2147483647, %v379_v59  ;;  %v399_v24 = vand.u32 2147483647, %v380_v60  ;;  %v493_v28 = vsub.f32 %v455_v9, %v474_v13 }
  0x87   : > { %v349_v20 = vld [vmem:[%s1280_s17 + $0x90] sm:$0xff]  ;;  %v400_v25 = vand.u32 2147483647, %v381_v0  ;;  %v401_v26 = vand.u32 2147483647, %v382_v5  ;;  %v496_v29 = vsub.f32 %v458_v14, %v477_v15  ;;  %v1348_v30 = vld [vmem:[%s1287_s12 + $0x28] sm:$0xff]  ;;  %s1481_s17 = scalar_lea.hbm %s1534_s6, %s814_s2 }
  0x88   : > { %v510_v27 = vand.u32 2147483647, %v491_v8  ;;  %v513_v32 = vand.u32 2147483647, %v494_v12  ;;  %v476_v34 = vld [vmem:[#allocation8 + $0x28] sm:$0xff]  ;;  %v1354_v35 = vld [vmem:[%s1287_s12 + $0x40] sm:$0xff]  ;;  %v387_v37 = vsub.f32 %v349_v20, %v368_v21 }
  0x89   : > { %v1356_v36 = vld [vmem:[#allocation8 + $0x40] sm:$0xff]  ;;  %v402_v40 = vand.u32 2147483647, %v383_v10  ;;  %v403_v42 = vand.u32 2147483647, %v384_v16  ;;  %v1362_v43 = vld [vmem:[%s1287_s12 + $0x38] sm:$0xff] }
  0x8a   : > { %v1364_v44 = vld [vmem:[#allocation8 + $0x38] sm:$0xff]  ;;  %v404_v45 = vand.u32 2147483647, %v385_v17  ;;  %v405_v46 = vand.u32 2147483647, %v386_v22  ;;  %v480_v16 = vld [vmem:[#allocation8 + $0x48] sm:$0xff] }
  0x8b   : > { %v512_v47 = vand.u32 2147483647, %v493_v28  ;;  %v515_v48 = vand.u32 2147483647, %v496_v29  ;;  %v497_v52 = vsub.f32 %v1362_v43, %v1364_v44  ;;  %v406_v54 = vand.u32 2147483647, %v387_v37 }
  0x8c   : > { %v461_v15 = vld [vmem:[%s1287_s12 + $0x48] sm:$0xff]  ;;  %v466_v28 = vld [vmem:[%s1287_s12 + $0x70] sm:$0xff]  ;;  %v485_v29 = vld [vmem:[#allocation8 + $0x70] sm:$0xff] }
  0x8d   : > { %v516_v21 = vand.u32 2147483647, %v497_v52  ;;  %v499_v22 = vsub.f32 %v461_v15, %v480_v16  ;;  %v504_v37 = vsub.f32 %v466_v28, %v485_v29 }
  0xf2   : > { %v1350_v31 = vpop.permute.xlu0 %531 }
  0xf3   : > { %v534_v38 = vmul.f32 %v1350_v31, %v1328_v33  ;;  %v536_v39 = vmul.f32 %v1350_v31, %v511_v41  ;;  %v495_v33 = vsub.f32 %v1348_v30, %v476_v34  ;;  %v498_v41 = vsub.f32 %v1354_v35, %v1356_v36 }
  0xf4   : > { %v535_v50 = vmul.f32 %v1350_v31, %v510_v27  ;;  %v538_v51 = vmul.f32 %v1350_v31, %v513_v32  ;;  %v537_v10 = vmul.f32 %v1350_v31, %v512_v47  ;;  %v540_v12 = vmul.f32 %v1350_v31, %v515_v48  ;;  %v482_v27 = vld [vmem:[#allocation8 + $0x58] sm:$0xff] }
  0xf5   : > { %572 = vrot.lane.b32.xlu1 %v534_v38, %s1081_s7  ;;  %576 = vrot.lane.b32.xlu0 %v536_v39, %s1081_s7  ;;  %v517_v13 = vand.u32 2147483647, %v498_v41  ;;  %v541_v30 = vmul.f32 %v1350_v31, %v516_v21  ;;  %v518_v32 = vand.u32 2147483647, %v499_v22  ;;  %v465_v38 = vld [vmem:[%s1287_s12 + $0x68] sm:$0xff]  ;;  %v484_v39 = vld [vmem:[#allocation8 + $0x68] sm:$0xff] }
  0xf6   : > { %v411_v49 = vpop.permute.xlu0 %410  ;;  %v523_v47 = vand.u32 2147483647, %v504_v37  ;;  %v486_v41 = vld [vmem:[#allocation8 + $0x78] sm:$0xff] }
  0xf7   : > { %v413_v55 = vmul.f32 %v411_v49, %v1335_v53  ;;  %v414_v56 = vmul.f32 %v411_v49, %v1341_v61  ;;  %v415_v57 = vmul.f32 %v411_v49, %v390_v1  ;;  %v416_v58 = vmul.f32 %v411_v49, %v391_v2  ;;  %v462_v53 = vld [vmem:[%s1287_s12 + $0x50] sm:$0xff]  ;;  %v481_v61 = vld [vmem:[#allocation8 + $0x50] sm:$0xff] }
  0xf8   : > { %v417_v59 = vmul.f32 %v411_v49, %v392_v3  ;;  %v418_v60 = vmul.f32 %v411_v49, %v393_v6  ;;  %v419_v62 = vmul.f32 %v411_v49, %v394_v7  ;;  %v420_v63 = vmul.f32 %v411_v49, %v395_v11 }
  0xf9   : > { %v421_v0 = vmul.f32 %v411_v49, %v396_v18  ;;  %v422_v4 = vmul.f32 %v411_v49, %v397_v19  ;;  %v423_v5 = vmul.f32 %v411_v49, %v398_v23  ;;  %v424_v8 = vmul.f32 %v411_v49, %v399_v24  ;;  %432 = vst [vmem:[%s1379_s19] sm:$0xff] %v413_v55  ;;  %v464_v18 = vld [vmem:[%s1287_s12 + $0x60] sm:$0xff]  ;;  %v483_v19 = vld [vmem:[#allocation8 + $0x60] sm:$0xff] }
  0xfa   : > { %433 = vst [vmem:[%s1379_s19 + $0x8] sm:$0xff] %v414_v56  ;;  %434 = vst [vmem:[%s1379_s19 + $0x10] sm:$0xff] %v415_v57  ;;  %574 = vrot.lane.b32.xlu1 %v535_v50, %s1081_s7  ;;  %v425_v1 = vmul.f32 %v411_v49, %v400_v25  ;;  %v426_v2 = vmul.f32 %v411_v49, %v401_v26  ;;  %v427_v3 = vmul.f32 %v411_v49, %v402_v40  ;;  %v463_v26 = vld [vmem:[%s1287_s12 + $0x58] sm:$0xff] }
  0xfb   : > { %435 = vst [vmem:[%s1379_s19 + $0x18] sm:$0xff] %v416_v58  ;;  %v428_v6 = vmul.f32 %v411_v49, %v403_v42  ;;  %436 = vst [vmem:[%s1379_s19 + $0x20] sm:$0xff] %v417_v59  ;;  %580 = vrot.lane.b32.xlu0 %v538_v51, %s1081_s7  ;;  %v429_v7 = vmul.f32 %v411_v49, %v404_v45  ;;  %v430_v9 = vmul.f32 %v411_v49, %v405_v46  ;;  %v468_v40 = vld [vmem:[%s1287_s12 + $0x80] sm:$0xff]  ;;  %v487_v42 = vld [vmem:[#allocation8 + $0x80] sm:$0xff] }
  0xfc   : > { %437 = vst [vmem:[%s1379_s19 + $0x28] sm:$0xff] %v418_v60  ;;  %438 = vst [vmem:[%s1379_s19 + $0x30] sm:$0xff] %v419_v62  ;;  %v514_v11 = vand.u32 2147483647, %v495_v33  ;;  %v500_v14 = vsub.f32 %v462_v53, %v481_v61  ;;  %v431_v17 = vmul.f32 %v411_v49, %v406_v54  ;;  %v542_v23 = vmul.f32 %v1350_v31, %v517_v13  ;;  %v467_v33 = vld [vmem:[%s1287_s12 + $0x78] sm:$0xff]  ;;  %v470_v49 = vld [vmem:[%s1287_s12 + $0x90] sm:$0xff] }
  0xfd   : > { %439 = vst [vmem:[%s1379_s19 + $0x38] sm:$0xff] %v420_v63  ;;  %440 = vst [vmem:[%s1379_s19 + $0x40] sm:$0xff] %v421_v0  ;;  %v502_v25 = vsub.f32 %v464_v18, %v483_v19  ;;  %v501_v34 = vsub.f32 %v463_v26, %v482_v27  ;;  %v543_v43 = vmul.f32 %v1350_v31, %v518_v32  ;;  %v489_v50 = vld [vmem:[#allocation8 + $0x90] sm:$0xff]  ;;  %v469_v58 = vld [vmem:[%s1287_s12 + $0x88] sm:$0xff]  ;;  %s1002_s12 = sshll.u32 %s1082_s29, 4  ;;  %s1003_s12 = int_to_ptr.vmem [resolvable:$false] %s1002_s12 }
  0xfe   : > { %441 = vst [vmem:[%s1379_s19 + $0x48] sm:$0xff] %v422_v4  ;;  %442 = vst [vmem:[%s1379_s19 + $0x50] sm:$0xff] %v423_v5  ;;  %578 = vrot.lane.b32.xlu1 %v537_v10, %s1081_s7  ;;  %v539_v20 = vmul.f32 %v1350_v31, %v514_v11  ;;  %v519_v24 = vand.u32 2147483647, %v500_v14  ;;  %v503_v45 = vsub.f32 %v465_v38, %v484_v39  ;;  %v488_v59 = vld [vmem:[#allocation8 + $0x88] sm:$0xff]  ;;  %s1004_s27 = scalar_lea.vmem %s1003_s12, 9472  ;;  %p1005_p11 = scmp.lt.s32.totalorder %s1483_s30, %s1003_s12 }
  0xff   : > { %443 = vst [vmem:[%s1379_s19 + $0x58] sm:$0xff] %v424_v8  ;;  %444 = vst [vmem:[%s1379_s19 + $0x60] sm:$0xff] %v425_v1  ;;  %584 = vrot.lane.b32.xlu0 %v540_v12, %s1081_s7  ;;  %v521_v36 = vand.u32 2147483647, %v502_v25  ;;  %v520_v44 = vand.u32 2147483647, %v501_v34  ;;  %v506_v48 = vsub.f32 %v468_v40, %v487_v42  ;;  %v505_v54 = vsub.f32 %v467_v33, %v486_v41  ;;  %p1006_p7 = scmp.lt.s32.totalorder %s1004_s27, %s998_s9 }
 0x100   : > { %445 = vst [vmem:[%s1379_s19 + $0x68] sm:$0xff] %v426_v2  ;;  %446 = vst [vmem:[%s1379_s19 + $0x70] sm:$0xff] %v427_v3  ;;  %v544_v35 = vmul.f32 %v1350_v31, %v519_v24  ;;  %v522_v52 = vand.u32 2147483647, %v503_v45  ;;  %v548_v55 = vmul.f32 %v1350_v31, %v523_v47  ;;  %v508_v57 = vsub.f32 %v470_v49, %v489_v50 }
 0x101   : > { %447 = vst [vmem:[%s1379_s19 + $0x78] sm:$0xff] %v428_v6  ;;  %448 = vst [vmem:[%s1379_s19 + $0x80] sm:$0xff] %v429_v7  ;;  %v546_v46 = vmul.f32 %v1350_v31, %v521_v36  ;;  %v545_v51 = vmul.f32 %v1350_v31, %v520_v44  ;;  %v525_v56 = vand.u32 2147483647, %v506_v48  ;;  %v524_v62 = vand.u32 2147483647, %v505_v54  ;;  %p1007_p9 = por %p1006_p7, %p1005_p11 }
 0x102   : > { %449 = vst [vmem:[%s1379_s19 + $0x88] sm:$0xff] %v430_v9  ;;  %451 = vst.msk [vmem:[%s1379_s19 + $0x90] sm:$0xff] %vm450_vm0, %v431_v17  ;;  %582 = vrot.lane.b32.xlu1 %v539_v20, %s1081_s7  ;;  %v547_v60 = vmul.f32 %v1350_v31, %v522_v52  ;;  %v507_v63 = vsub.f32 %v469_v58, %v488_v59  ;;  %v527_v4 = vand.u32 2147483647, %v508_v57 }
 0x103   : > { %588 = vrot.lane.b32.xlu0 %v542_v23, %s1081_s7  ;;  %v550_v0 = vmul.f32 %v1350_v31, %v525_v56  ;;  %v549_v5 = vmul.f32 %v1350_v31, %v524_v62  ;;  %p1008_p10 = pnand %p1007_p9, %p1001_p12 }
 0x104   : > { %v526_v8 = vand.u32 2147483647, %v507_v63  ;;  %v552_v53 = vmul.f32 %v1350_v31, %v527_v4 }
 0x106   : > { %586 = vrot.lane.b32.xlu1 %v541_v30, %s1081_s7  ;;  %v551_v61 = vmul.f32 %v1350_v31, %v526_v8 }
 0x107   : > { %592 = vrot.lane.b32.xlu0 %v544_v35, %s1081_s7 }
 0x10a   : > { %590 = vrot.lane.b32.xlu1 %v543_v43, %s1081_s7 }
 0x10b   : > { %596 = vrot.lane.b32.xlu0 %v546_v46, %s1081_s7 }
 0x10e   : > { %594 = vrot.lane.b32.xlu1 %v545_v51, %s1081_s7 }
 0x10f   : > { %600 = vrot.lane.b32.xlu0 %v548_v55, %s1081_s7 }
 0x112   : > { %598 = vrot.lane.b32.xlu1 %v547_v60, %s1081_s7 }
 0x113   : > { %604 = vrot.lane.b32.xlu0 %v550_v0, %s1081_s7 }
 0x116   : > { %602 = vrot.lane.b32.xlu1 %v549_v5, %s1081_s7 }
 0x117   : > { %608 = vrot.lane.b32.xlu0 %v552_v53, %s1081_s7 }
 0x11a   : > { %606 = vrot.lane.b32.xlu1 %v551_v61, %s1081_s7 }
 0x167   : > { %v573_v1 = vpop.permute.xlu1 %572  ;;  %v577_v2 = vpop.permute.xlu0 %576 }
 0x168   : > { %648 = vst.msk [vmem:[%s1379_s19 + $0x90] sm:$0xff] %vm647_vm1, %v573_v1 }
 0x16c   : > { %v575_v3 = vpop.permute.xlu1 %574 }
 0x16d   : > { %v610_v6 = vsel %vm450_vm0, %v573_v1, %v575_v3  ;;  %v611_v7 = vsel %vm450_vm0, %v575_v3, %v577_v2  ;;  %v581_v9 = vpop.permute.xlu0 %580 }
 0x16e   : > { %649 = vst [vmem:[%s1379_s19 + $0x98] sm:$0xff] %v610_v6  ;;  %650 = vst [vmem:[%s1379_s19 + $0xa0] sm:$0xff] %v611_v7 }
 0x170   : > { %v579_v10 = vpop.permute.xlu1 %578 }
 0x171   : > { %v612_v31 = vsel %vm450_vm0, %v577_v2, %v579_v10  ;;  %v613_v11 = vsel %vm450_vm0, %v579_v10, %v581_v9  ;;  %v585_v12 = vpop.permute.xlu0 %584 }
 0x172   : > { %651 = vst [vmem:[%s1379_s19 + $0xa8] sm:$0xff] %v612_v31  ;;  %652 = vst [vmem:[%s1379_s19 + $0xb0] sm:$0xff] %v613_v11 }
 0x174   : > { %v583_v13 = vpop.permute.xlu1 %582 }
 0x175   : > { %v614_v14 = vsel %vm450_vm0, %v581_v9, %v583_v13  ;;  %v615_v15 = vsel %vm450_vm0, %v583_v13, %v585_v12  ;;  %v589_v16 = vpop.permute.xlu0 %588 }
 0x176   : > { %653 = vst [vmem:[%s1379_s19 + $0xb8] sm:$0xff] %v614_v14  ;;  %654 = vst [vmem:[%s1379_s19 + $0xc0] sm:$0xff] %v615_v15 }
 0x178   : > { %v587_v17 = vpop.permute.xlu1 %586 }
 0x179   : > { %v616_v18 = vsel %vm450_vm0, %v585_v12, %v587_v17  ;;  %v617_v19 = vsel %vm450_vm0, %v587_v17, %v589_v16  ;;  %v593_v20 = vpop.permute.xlu0 %592 }
 0x17a   : > { %655 = vst [vmem:[%s1379_s19 + $0xc8] sm:$0xff] %v616_v18  ;;  %656 = vst [vmem:[%s1379_s19 + $0xd0] sm:$0xff] %v617_v19 }
 0x17c   : > { %v591_v21 = vpop.permute.xlu1 %590 }
 0x17d   : > { %v618_v22 = vsel %vm450_vm0, %v589_v16, %v591_v21  ;;  %v619_v23 = vsel %vm450_vm0, %v591_v21, %v593_v20  ;;  %v597_v24 = vpop.permute.xlu0 %596 }
 0x17e   : > { %657 = vst [vmem:[%s1379_s19 + $0xd8] sm:$0xff] %v618_v22  ;;  %658 = vst [vmem:[%s1379_s19 + $0xe0] sm:$0xff] %v619_v23 }
 0x180   : > { %v595_v25 = vpop.permute.xlu1 %594 }
 0x181   : > { %v620_v26 = vsel %vm450_vm0, %v593_v20, %v595_v25  ;;  %v621_v27 = vsel %vm450_vm0, %v595_v25, %v597_v24  ;;  %v601_v28 = vpop.permute.xlu0 %600 }
 0x182   : > { %659 = vst [vmem:[%s1379_s19 + $0xe8] sm:$0xff] %v620_v26  ;;  %660 = vst [vmem:[%s1379_s19 + $0xf0] sm:$0xff] %v621_v27 }
 0x184   : > { %v599_v29 = vpop.permute.xlu1 %598 }
 0x185   : > { %v622_v30 = vsel %vm450_vm0, %v597_v24, %v599_v29  ;;  %v623_v32 = vsel %vm450_vm0, %v599_v29, %v601_v28  ;;  %v605_v34 = vpop.permute.xlu0 %604 }
 0x186   : > { %661 = vst [vmem:[%s1379_s19 + $0xf8] sm:$0xff] %v622_v30  ;;  %662 = vst [vmem:[%s1379_s19 + $0x100] sm:$0xff] %v623_v32 }
 0x188   : > { %v603_v35 = vpop.permute.xlu1 %602 }
 0x189   : > { %v624_v36 = vsel %vm450_vm0, %v601_v28, %v603_v35  ;;  %v625_v37 = vsel %vm450_vm0, %v603_v35, %v605_v34  ;;  %v609_v38 = vpop.permute.xlu0 %608 }
 0x18a   : > { %663 = vst [vmem:[%s1379_s19 + $0x108] sm:$0xff] %v624_v36  ;;  %664 = vst [vmem:[%s1379_s19 + $0x110] sm:$0xff] %v625_v37 }
 0x18c   : > { %v607_v39 = vpop.permute.xlu1 %606 }
 0x18d   : > { %v626_v40 = vsel %vm450_vm0, %v605_v34, %v607_v39  ;;  %v627_v42 = vsel %vm450_vm0, %v607_v39, %v609_v38 }
 0x18e   : > { %665 = vst [vmem:[%s1379_s19 + $0x118] sm:$0xff] %v626_v40  ;;  %667 = vst.msk [vmem:[%s1379_s19 + $0x120] sm:$0xff] %vm666_vm2, %v627_v42 }
 0x18f   : > { %1011 = shalt.err (!%p1008_p10)
}
 0x190   : > { %s1012_s13 = scalar_lea.hbm %s1481_s17, 4736  ;;  %s1016_s8 = scalar_lea.hbm %s1534_s6, 9472 }
 0x191   : > { %p1013_p13 = scmp.ne.s32.totalorder %s1481_s17, %s1012_s13  ;;  %p1017_p0 = scmp.lt.s32.totalorder %s1481_s17, %s1534_s6 }
 0x192   : > { %p1018_p1 = scmp.lt.s32.totalorder %s1016_s8, %s1012_s13 }
 0x193   : > { %p1014_p5 = pnand %p1013_p13, %p1557_p6 }
 0x194   : > { %p1019_p2 = por %p1018_p1, %p1017_p0 }
 0x195   : > { %p1015_p3 = pneg %p1014_p5 }
 0x197   : > { %p1020_p4 = pnand %p1019_p2, %p1015_p3 }
 0x199   : > { %1023 = shalt.err (!%p1020_p4)
}
 0x19a   : > { %827 = dma.vmem_to_hbm [thread:$0]  (%p1557_p6), %s1483_s30, 4736, %s1481_s17, %s669_s25  }
 0x19b PF: > { %s695_s19 = sand.u32 1, %s1062_s21   ;;  %p1558_p8 = scmp.ne.s32.totalorder %s1542_s28, 0 }
 0x19c   : > { %p1559_p12 = scmp.ge.s32.totalorder %s1074_s24, 2  ;;  %s696_s2 = scalar_lea.sflag [#allocation4], %s695_s19 }
 0x19e   : > { %p844_p11 = pnand %p1559_p12, %p1558_p8 }
 0x1a0   : > { %p845_p7 = pneg %p844_p11 }
 0x1a2   : > { %1057 = dma.done.wait (%p845_p7), %s696_s2, 4736  }
 0x1a3   : > { %1059 = vsyncadd (%p845_p7), %s696_s2, 4294962560  ;;  %p23_p9 = scmp.ge.s32.totalorder %s1172_s11, 4   ;;  %s1560_s21 = smov %s1066_s22 }
 0x1a4   : > { %s1561_s22 = smov %s1070_s23  ;;  %s1562_s23 = smov %s1199_s20 }
 0x1a5   : > { %s1563_s24 = smov %s1172_s11  ;;  %25 = sbr.rel (!%p23_p9) target bundleno = 10 (0xa), region = 110 }
 0x1aa   :  { %701 = vsyncpa [#allocation3], 1 }
 0x1ab   :  { %703 = vsyncpa [#allocation3 + $0x1], 1 }
 0x1ac   :  { %704 = vsyncpa [#allocation6], 1 }
 0x1ad   :  { %706 = vsyncpa [#allocation6 + $0x1], 1 }
 0x1ae   :  { %707 = vsyncpa [#allocation9], 1 }
 0x1af   :  { %708 = vsyncpa [#allocation4], 1 }
 0x1b0   :  { %710 = vsyncpa [#allocation4 + $0x1], 1 }

</bundles_post_ra>
